<compile_context>
chip_gen: v7x
topology: tpu7x:2x2x1
jax: 0.10.0
libtpu: 0.0.40
codegen_flags: <defaults>
</compile_context>

<pallas_src>
import functools

import jax
import jax.numpy as jnp
from jax import lax
from jax.experimental import pallas as pl
from jax.experimental.pallas import tpu as pltpu

_EPS = 1e-5


def _coxph_kernel(x_ref, w1_ref, bn_ref, b2_ref, out_ref,
                  s_buf, sum_ref, sumsq_ref, scale_ref, shift_ref, *, batch):
    # x_ref:  [TB, Din]   w1_ref: [1, Din]   bn_ref: SMEM [2] = (gamma, beta)
    # b2_ref: [1, Dout]   out_ref: [TB, Dout]
    # s_buf:  VMEM [nt, TB, 1]   sum/sumsq/scale/shift: VMEM [1, 1]
    p = pl.program_id(0)   # 0 = statistics pass, 1 = normalize / emit pass
    i = pl.program_id(1)   # batch tile index

    @pl.when((p == 0) & (i == 0))
    def _init():
        sum_ref[...] = jnp.zeros_like(sum_ref)
        sumsq_ref[...] = jnp.zeros_like(sumsq_ref)

    @pl.when(p == 0)
    def _phase0():
        # linear1 (no bias) as a VPU multiply + cross-lane reduce (f32 accum).
        prod = x_ref[...] * w1_ref[...]                                # [TB, Din]
        s = jnp.sum(prod.astype(jnp.float32), axis=-1, keepdims=True)  # [TB, 1]
        s_buf[i] = s                                  # stash for the emit pass
        sum_ref[...] += jnp.sum(s, keepdims=True)
        sumsq_ref[...] += jnp.sum(s * s, keepdims=True)

    @pl.when(p == 1)
    def _phase1():
        @pl.when(i == 0)
        def _finalize_stats():
            inv_b = jnp.float32(1.0 / batch)
            mean = sum_ref[...] * inv_b
            var = sumsq_ref[...] * inv_b - mean * mean      # biased variance
            inv_std = lax.rsqrt(var + jnp.float32(_EPS))
            scale = bn_ref[0] * inv_std                     # gamma / sqrt(var+eps)
            scale_ref[...] = scale
            shift_ref[...] = bn_ref[1] - mean * scale       # beta - mean*scale

        s = s_buf[i]                                        # [TB, 1] f32
        yn = s * scale_ref[...] + shift_ref[...]            # BN folded into one FMA
        # linear2: weight frozen to all-ones -> broadcast add of the bias only.
        out = yn + b2_ref[...]                              # [TB,1]+[1,Dout]->[TB,Dout]
        out_ref[...] = out.astype(out_ref.dtype)


def _pick_block_rows(batch, din, itemsize):
    """Largest batch tile that divides `batch` and keeps the working set in VMEM."""
    stash_bytes = batch * 128 * 4          # (nt, tb, 1) f32 stash, lanes pad to 128
    budget = 48 * 1024 * 1024              # headroom below 64 MiB (v7x physical)
    for tb in (2048, 1024, 512, 256, 128, 64, 32, 16, 8):
        if batch % tb:
            continue
        need = (2 * tb * din * itemsize    # double-buffered x tiles
                + 2 * tb * 128 * 4         # double-buffered out tiles (lane pad)
                + stash_bytes)
        if need <= budget:
            return tb
    return batch                            # small / ragged batch: single block


def coxph_forward(x, w1, gamma, beta, b2, *, block_rows=None):
    """Forward pass of CoxPH / PHBlock (batch_norm=True, training-mode stats).

    x:  [B, Din]          input
    w1: [1, Din]          linear1.weight (no bias)
    gamma, beta: scalars  BatchNorm1d(1) affine parameters
    b2: [1, Dout]         linear2.bias   (linear2.weight is frozen all-ones)
    """
    batch, din = x.shape
    dout = b2.shape[-1]
    x_item = jnp.dtype(x.dtype).itemsize

    tb = block_rows or _pick_block_rows(batch, din, x_item)
    assert batch % tb == 0, "block_rows must divide the batch size"
    nt = batch // tb

    # Keep the streaming multiply in the input dtype (bf16 x stays bf16);
    # accumulation happens in f32 inside the kernel.
    w1 = w1.reshape(1, din).astype(x.dtype)
    b2 = b2.reshape(1, dout).astype(jnp.float32)
    bn_params = jnp.concatenate([jnp.asarray(gamma, jnp.float32).reshape(1),
                                 jnp.asarray(beta, jnp.float32).reshape(1)])

    kernel = functools.partial(_coxph_kernel, batch=batch)

    # Explicit VMEM budget derived from the actual working set (+ headroom).
    vmem_need = (2 * tb * din * x_item          # double-buffered x tiles
                 + 2 * tb * 128 * 4             # double-buffered out tiles
                 + nt * tb * 128 * 4            # s stash (lane-padded)
                 + 64 * 1024)                   # small scratches / params
    vmem_limit = int(min(128 * 1024 * 1024,
                         max(32 * 1024 * 1024, vmem_need + 4 * 1024 * 1024)))

    cost = pl.CostEstimate(
        flops=2 * batch * din + 6 * batch,
        transcendentals=0,
        bytes_accessed=batch * din * x_item + batch * dout * 4
                       + din * x_item + dout * 4,
    )

    return pl.pallas_call(
        kernel,
        out_shape=jax.ShapeDtypeStruct((batch, dout), jnp.float32),
        grid=(2, nt),
        in_specs=[
            # x: streamed over batch tiles in phase 0; parked on the last tile
            # in phase 1 (no re-fetch, no extra HBM traffic).
            pl.BlockSpec((tb, din),
                         lambda p, i: ((1 - p) * i + p * (nt - 1), 0)),
            pl.BlockSpec((1, din), lambda p, i: (0, 0)),        # w1 row (resident)
            pl.BlockSpec(memory_space=pltpu.MemorySpace.SMEM),  # [gamma, beta]
            pl.BlockSpec((1, dout), lambda p, i: (0, 0)),       # bias (resident)
        ],
        # Output block index is pinned to 0 during phase 0 (never flushed until
        # written), then walks the batch tiles during phase 1.
        out_specs=pl.BlockSpec((tb, dout), lambda p, i: (p * i, 0)),
        scratch_shapes=[
            pltpu.VMEM((nt, tb, 1), jnp.float32),   # stashed linear1 activations
            pltpu.VMEM((1, 1), jnp.float32),        # sum(s)
            pltpu.VMEM((1, 1), jnp.float32),        # sum(s*s)
            pltpu.VMEM((1, 1), jnp.float32),        # folded BN scale
            pltpu.VMEM((1, 1), jnp.float32),        # folded BN shift
        ],
        compiler_params=pltpu.CompilerParams(
            # Both axes carry a sequential dependency (stats accumulation, then
            # finalize), so they must be "arbitrary".
            dimension_semantics=("arbitrary", "arbitrary"),
            vmem_limit_bytes=vmem_limit,
        ),
        cost_estimate=cost,
    )(x, w1, bn_params, b2)


def reference_forward(x, w1, gamma, beta, b2):
    s = x @ w1.reshape(1, -1).T                       # linear1 (no bias) -> [B, 1]
    mean = jnp.mean(s)
    var = jnp.mean((s - mean) ** 2)                   # biased var (PyTorch BN fwd)
    yn = (s - mean) / jnp.sqrt(var + _EPS) * gamma + beta
    return yn @ jnp.ones((1, b2.shape[-1]), jnp.float32) + b2   # linear2, W == ones


if __name__ == "__main__":
    B, DIM_IN, DIM_OUT = 256, 128, 8
    TB = 64   # -> grid (2, 4): exercises multi-tile streaming + two-phase BN

    key = jax.random.PRNGKey(0)
    k_x, k_w1, k_b2 = jax.random.split(key, 3)

    x = jax.random.normal(k_x, (B, DIM_IN), dtype=jnp.float32)

    # linear1.weight: [1, dim_in], default nn.Linear init range
    bound = 1.0 / (DIM_IN ** 0.5)
    w1 = jax.random.uniform(k_w1, (1, DIM_IN), minval=-bound, maxval=bound,
                            dtype=jnp.float32)
    # BatchNorm1d(1) affine params (default init)
    gamma = jnp.float32(1.0)
    beta = jnp.float32(0.0)
    # linear2.bias ~ Normal(0, 0.5); linear2.weight == ones (frozen, not needed)
    b2 = 0.5 * jax.random.normal(k_b2, (1, DIM_OUT), dtype=jnp.float32)

    out = coxph_forward(x, w1, gamma, beta, b2, block_rows=TB)
    out = jax.block_until_ready(out)

    ref = reference_forward(x, w1, gamma, beta, b2)
    assert out.shape == (B, DIM_OUT)
    assert jnp.allclose(out, ref, atol=1e-4, rtol=1e-4), "mismatch vs reference"

    print("KERNEL_OK")
</pallas_src>

<mosaic_0001>
module attributes {stable_mosaic.version = 11 : i64} {
  func.func @_coxph_kernel(%arg0: i32, %arg1: i32, %arg2: memref<64x128xf32, #tpu.memory_space<vmem>>, %arg3: memref<1x128xf32, #tpu.memory_space<vmem>>, %arg4: memref<2xf32, #tpu.memory_space<smem>>, %arg5: memref<1x8xf32, #tpu.memory_space<vmem>>, %arg6: memref<64x8xf32, #tpu.memory_space<vmem>>, %arg7: memref<4x64x1xf32, #tpu.memory_space<vmem>>, %arg8: memref<1x1xf32, #tpu.memory_space<vmem>>, %arg9: memref<1x1xf32, #tpu.memory_space<vmem>>, %arg10: memref<1x1xf32, #tpu.memory_space<vmem>>, %arg11: memref<1x1xf32, #tpu.memory_space<vmem>>) attributes {dimension_semantics = [#tpu.dimension_semantics<arbitrary>, #tpu.dimension_semantics<arbitrary>], iteration_bounds = array<i64: 2, 4>, scalar_prefetch = 0 : i64, scratch_operands = 5 : i64, tpu.core_type = #tpu.core_type<tc>, window_params = [{transform_indices = @transform_0, window_bounds = array<i64: 64, 128>}, {pipeline_mode = #tpu.pipeline_mode<synchronous>, transform_indices = @transform_1, window_bounds = array<i64: 1, 128>}, {transform_indices = @transform_2, window_bounds = array<i64: 2>}, {pipeline_mode = #tpu.pipeline_mode<synchronous>, transform_indices = @transform_3, window_bounds = array<i64: 1, 8>}, {transform_indices = @transform_4, window_bounds = array<i64: 64, 8>}]} {
    %c0_i32 = arith.constant 0 : i32
    %0 = arith.cmpi eq, %arg0, %c0_i32 : i32
    %c0_i32_0 = arith.constant 0 : i32
    %1 = arith.cmpi eq, %arg1, %c0_i32_0 : i32
    %2 = arith.andi %0, %1 : i1
    %3 = arith.extui %2 : i1 to i32
    %c0_i32_1 = arith.constant 0 : i32
    %4 = arith.cmpi ne, %3, %c0_i32_1 : i32
    scf.if %4 {
      %cst = arith.constant 0.000000e+00 : f32
      %11 = vector.broadcast %cst : f32 to vector<1x1xf32>
      %c0 = arith.constant 0 : index
      %c0_5 = arith.constant 0 : index
      %12 = vector.load %arg8[%c0, %c0_5] : memref<1x1xf32, #tpu.memory_space<vmem>>, vector<1x1xf32>
      tpu.vector_store %arg8[%c0, %c0_5], %11 {strides = array<i32>} : memref<1x1xf32, #tpu.memory_space<vmem>>, vector<1x1xf32>,
      %cst_6 = arith.constant 0.000000e+00 : f32
      %13 = vector.broadcast %cst_6 : f32 to vector<1x1xf32>
      %c0_7 = arith.constant 0 : index
      %c0_8 = arith.constant 0 : index
      %14 = vector.load %arg9[%c0_7, %c0_8] : memref<1x1xf32, #tpu.memory_space<vmem>>, vector<1x1xf32>
      tpu.vector_store %arg9[%c0_7, %c0_8], %13 {strides = array<i32>} : memref<1x1xf32, #tpu.memory_space<vmem>>, vector<1x1xf32>,
    } else {
    }
    %c0_i32_2 = arith.constant 0 : i32
    %5 = arith.cmpi eq, %arg0, %c0_i32_2 : i32
    %6 = arith.extui %5 : i1 to i32
    %c0_i32_3 = arith.constant 0 : i32
    %7 = arith.cmpi ne, %6, %c0_i32_3 : i32
    scf.if %7 {
      %c0 = arith.constant 0 : index
      %c0_5 = arith.constant 0 : index
      %11 = vector.load %arg2[%c0, %c0_5] : memref<64x128xf32, #tpu.memory_space<vmem>>, vector<64x128xf32>
      %c0_6 = arith.constant 0 : index
      %c0_7 = arith.constant 0 : index
      %12 = vector.load %arg3[%c0_6, %c0_7] : memref<1x128xf32, #tpu.memory_space<vmem>>, vector<1x128xf32>
      %13 = vector.broadcast %12 : vector<1x128xf32> to vector<64x128xf32>
      %14 = arith.mulf %11, %13 : vector<64x128xf32>
      %cst = arith.constant dense<0.000000e+00> : vector<64xf32>
      %15 = vector.multi_reduction <add>, %14, %cst [1] : vector<64x128xf32> to vector<64xf32>
      %16 = vector.shape_cast %15 : vector<64xf32> to vector<64x1xf32>
      %17 = arith.index_cast %arg1 : i32 to index
      %c0_8 = arith.constant 0 : index
      %c0_9 = arith.constant 0 : index
      %18 = vector.load %arg7[%17, %c0_8, %c0_9] : memref<4x64x1xf32, #tpu.memory_space<vmem>>, vector<1x64x1xf32>
      %19 = vector.shape_cast %18 : vector<1x64x1xf32> to vector<64x1xf32>
      %20 = vector.shape_cast %16 : vector<64x1xf32> to vector<1x64x1xf32>
      tpu.vector_store %arg7[%17, %c0_8, %c0_9], %20 {strides = array<i32>} : memref<4x64x1xf32, #tpu.memory_space<vmem>>, vector<1x64x1xf32>,
      %c0_10 = arith.constant 0 : index
      %c0_11 = arith.constant 0 : index
      %21 = vector.load %arg8[%c0_10, %c0_11] : memref<1x1xf32, #tpu.memory_space<vmem>>, vector<1x1xf32>
      %22 = vector.shape_cast %16 : vector<64x1xf32> to vector<1x64x1xf32>
      %cst_12 = arith.constant dense<0.000000e+00> : vector<1xf32>
      %23 = vector.multi_reduction <add>, %22, %cst_12 [1, 2] : vector<1x64x1xf32> to vector<1xf32>
      %24 = vector.shape_cast %23 : vector<1xf32> to vector<1x1x1xf32>
      %25 = vector.extract %24[0, 0, 0] : f32 from vector<1x1x1xf32>
      %26 = vector.broadcast %25 : f32 to vector<1x1xf32>
      %27 = arith.addf %21, %26 : vector<1x1xf32>
      %c0_13 = arith.constant 0 : index
      %c0_14 = arith.constant 0 : index
      %28 = vector.load %arg8[%c0_13, %c0_14] : memref<1x1xf32, #tpu.memory_space<vmem>>, vector<1x1xf32>
      tpu.vector_store %arg8[%c0_13, %c0_14], %27 {strides = array<i32>} : memref<1x1xf32, #tpu.memory_space<vmem>>, vector<1x1xf32>,
      %c0_15 = arith.constant 0 : index
      %c0_16 = arith.constant 0 : index
      %29 = vector.load %arg9[%c0_15, %c0_16] : memref<1x1xf32, #tpu.memory_space<vmem>>, vector<1x1xf32>
      %30 = arith.mulf %16, %16 : vector<64x1xf32>
      %31 = vector.shape_cast %30 : vector<64x1xf32> to vector<1x64x1xf32>
      %cst_17 = arith.constant dense<0.000000e+00> : vector<1xf32>
      %32 = vector.multi_reduction <add>, %31, %cst_17 [1, 2] : vector<1x64x1xf32> to vector<1xf32>
      %33 = vector.shape_cast %32 : vector<1xf32> to vector<1x1x1xf32>
      %34 = vector.extract %33[0, 0, 0] : f32 from vector<1x1x1xf32>
      %35 = vector.broadcast %34 : f32 to vector<1x1xf32>
      %36 = arith.addf %29, %35 : vector<1x1xf32>
      %c0_18 = arith.constant 0 : index
      %c0_19 = arith.constant 0 : index
      %37 = vector.load %arg9[%c0_18, %c0_19] : memref<1x1xf32, #tpu.memory_space<vmem>>, vector<1x1xf32>
      tpu.vector_store %arg9[%c0_18, %c0_19], %36 {strides = array<i32>} : memref<1x1xf32, #tpu.memory_space<vmem>>, vector<1x1xf32>,
    } else {
    }
    %c1_i32 = arith.constant 1 : i32
    %8 = arith.cmpi eq, %arg0, %c1_i32 : i32
    %9 = arith.extui %8 : i1 to i32
    %c0_i32_4 = arith.constant 0 : i32
    %10 = arith.cmpi ne, %9, %c0_i32_4 : i32
    scf.if %10 {
      %c0_i32_5 = arith.constant 0 : i32
      %11 = arith.cmpi eq, %arg1, %c0_i32_5 : i32
      %12 = arith.extui %11 : i1 to i32
      %c0_i32_6 = arith.constant 0 : i32
      %13 = arith.cmpi ne, %12, %c0_i32_6 : i32
      scf.if %13 {
        %c0_16 = arith.constant 0 : index
        %c0_17 = arith.constant 0 : index
        %28 = vector.load %arg8[%c0_16, %c0_17] : memref<1x1xf32, #tpu.memory_space<vmem>>, vector<1x1xf32>
        %cst = arith.constant 3.906250e-03 : f32
        %29 = vector.broadcast %cst : f32 to vector<1x1xf32>
        %30 = arith.mulf %28, %29 : vector<1x1xf32>
        %c0_18 = arith.constant 0 : index
        %c0_19 = arith.constant 0 : index
        %31 = vector.load %arg9[%c0_18, %c0_19] : memref<1x1xf32, #tpu.memory_space<vmem>>, vector<1x1xf32>
        %cst_20 = arith.constant 3.906250e-03 : f32
        %32 = vector.broadcast %cst_20 : f32 to vector<1x1xf32>
        %33 = arith.mulf %31, %32 : vector<1x1xf32>
        %34 = arith.mulf %30, %30 : vector<1x1xf32>
        %35 = arith.subf %33, %34 : vector<1x1xf32>
        %cst_21 = arith.constant 9.99999974E-6 : f32
        %36 = vector.broadcast %cst_21 : f32 to vector<1x1xf32>
        %37 = arith.addf %35, %36 : vector<1x1xf32>
        %38 = math.rsqrt %37 : vector<1x1xf32>
        %c0_22 = arith.constant 0 : index
        %39 = memref.load %arg4[%c0_22] : memref<2xf32, #tpu.memory_space<smem>>
        %40 = vector.broadcast %39 : f32 to vector<1x1xf32>
        %41 = arith.mulf %40, %38 : vector<1x1xf32>
        %c0_23 = arith.constant 0 : index
        %c0_24 = arith.constant 0 : index
        %42 = vector.load %arg10[%c0_23, %c0_24] : memref<1x1xf32, #tpu.memory_space<vmem>>, vector<1x1xf32>
        tpu.vector_store %arg10[%c0_23, %c0_24], %41 {strides = array<i32>} : memref<1x1xf32, #tpu.memory_space<vmem>>, vector<1x1xf32>,
        %c1 = arith.constant 1 : index
        %43 = memref.load %arg4[%c1] : memref<2xf32, #tpu.memory_space<smem>>
        %44 = arith.mulf %30, %41 : vector<1x1xf32>
        %45 = vector.broadcast %43 : f32 to vector<1x1xf32>
        %46 = arith.subf %45, %44 : vector<1x1xf32>
        %c0_25 = arith.constant 0 : index
        %c0_26 = arith.constant 0 : index
        %47 = vector.load %arg11[%c0_25, %c0_26] : memref<1x1xf32, #tpu.memory_space<vmem>>, vector<1x1xf32>
        tpu.vector_store %arg11[%c0_25, %c0_26], %46 {strides = array<i32>} : memref<1x1xf32, #tpu.memory_space<vmem>>, vector<1x1xf32>,
      } else {
      }
      %14 = arith.index_cast %arg1 : i32 to index
      %c0 = arith.constant 0 : index
      %c0_7 = arith.constant 0 : index
      %15 = vector.load %arg7[%14, %c0, %c0_7] : memref<4x64x1xf32, #tpu.memory_space<vmem>>, vector<1x64x1xf32>
      %16 = vector.shape_cast %15 : vector<1x64x1xf32> to vector<64x1xf32>
      %c0_8 = arith.constant 0 : index
      %c0_9 = arith.constant 0 : index
      %17 = vector.load %arg10[%c0_8, %c0_9] : memref<1x1xf32, #tpu.memory_space<vmem>>, vector<1x1xf32>
      %18 = vector.broadcast %17 : vector<1x1xf32> to vector<64x1xf32>
      %19 = arith.mulf %16, %18 : vector<64x1xf32>
      %c0_10 = arith.constant 0 : index
      %c0_11 = arith.constant 0 : index
      %20 = vector.load %arg11[%c0_10, %c0_11] : memref<1x1xf32, #tpu.memory_space<vmem>>, vector<1x1xf32>
      %21 = vector.broadcast %20 : vector<1x1xf32> to vector<64x1xf32>
      %22 = arith.addf %19, %21 : vector<64x1xf32>
      %c0_12 = arith.constant 0 : index
      %c0_13 = arith.constant 0 : index
      %23 = vector.load %arg5[%c0_12, %c0_13] : memref<1x8xf32, #tpu.memory_space<vmem>>, vector<1x8xf32>
      %24 = vector.broadcast %22 : vector<64x1xf32> to vector<64x8xf32>
      %25 = vector.broadcast %23 : vector<1x8xf32> to vector<64x8xf32>
      %26 = arith.addf %24, %25 : vector<64x8xf32>
      %c0_14 = arith.constant 0 : index
      %c0_15 = arith.constant 0 : index
      %27 = vector.load %arg6[%c0_14, %c0_15] : memref<64x8xf32, #tpu.memory_space<vmem>>, vector<64x8xf32>
      tpu.vector_store %arg6[%c0_14, %c0_15], %26 {strides = array<i32>} : memref<64x8xf32, #tpu.memory_space<vmem>>, vector<64x8xf32>,
    } else {
    }
    return
  }
  func.func @transform_0(%arg0: i32, %arg1: i32) -> (i32, i32) {
    %c1_i32 = arith.constant 1 : i32
    %0 = arith.subi %c1_i32, %arg0 : i32
    %1 = arith.muli %0, %arg1 : i32
    %c3_i32 = arith.constant 3 : i32
    %2 = arith.muli %arg0, %c3_i32 : i32
    %3 = arith.addi %1, %2 : i32
    %c0_i32 = arith.constant 0 : i32
    %c0_i32_0 = arith.constant 0 : i32
    return %3, %c0_i32 : i32, i32
  }
  func.func @transform_1(%arg0: i32, %arg1: i32) -> (i32, i32) {
    %c0_i32 = arith.constant 0 : i32
    %c0_i32_0 = arith.constant 0 : i32
    %c0_i32_1 = arith.constant 0 : i32
    return %c0_i32, %c0_i32_0 : i32, i32
  }
  func.func @transform_2(%arg0: i32, %arg1: i32) -> i32 {
    %c0_i32 = arith.constant 0 : i32
    %c0_i32_0 = arith.constant 0 : i32
    return %c0_i32 : i32
  }
  func.func @transform_3(%arg0: i32, %arg1: i32) -> (i32, i32) {
    %c0_i32 = arith.constant 0 : i32
    %c0_i32_0 = arith.constant 0 : i32
    %c0_i32_1 = arith.constant 0 : i32
    return %c0_i32, %c0_i32_0 : i32, i32
  }
  func.func @transform_4(%arg0: i32, %arg1: i32) -> (i32, i32) {
    %0 = arith.muli %arg0, %arg1 : i32
    %c0_i32 = arith.constant 0 : i32
    %c0_i32_0 = arith.constant 0 : i32
    return %0, %c0_i32 : i32, i32
  }
}

</mosaic_0001>

<bundles_post_ra>
// kernel: tpu_custom_call.1
= control target key start
LH: loop header
LB: loop body
LE: loop exit
PB: predicated region body
PF: predicated region fallthrough
CT: control target
= control target key end

     0   :  { %s1138_s0 = inlined_call_operand.hbm [shape: f32[256,128], index: 0, kind: input, shape index: {}]   ;;  %s1139_s1 = inlined_call_operand.vmem [shape: f32[1,128], index: 1, kind: input, shape index: {}]   ;;  %s1140_s2 = inlined_call_operand.vmem [shape: f32[2], index: 2, kind: input, shape index: {}]   ;;  %s1141_s3 = inlined_call_operand.vmem [shape: f32[1,8], index: 3, kind: input, shape index: {}]   ;;  %s1142_s4 = inlined_call_operand.vmem [shape: f32[256,8], index: 4, kind: output, shape index: {}]  }
   0x1   :  { %1149 = sst [smem:[#allocation15_spill]] %s1140_s2 }
   0x2   :  { %9 = vsyncpa [#allocation8], 0 }
   0x3   :  { %11 = vsyncpa [#allocation8 + $0x1], 0 }
   0x4   :  { %12 = vsyncpa [#allocation9], 0  ;;  %s891_s15 = smov 0   ;;  %s893_s16 = smov 0  }
   0x5   :  { %s895_s17 = smov 0   ;;  %s897_s18 = smov 0  }
   0x6   :  { %s899_s19 = smov 0   ;;  %s901_s20 = smov 0  }
   0x7   :  { %s903_s21 = smov 0   ;;  %s905_s22 = smov 0  }
   0x8 LB: > { %1150 = sst [smem:[#allocation13_spill]] %s854_s21  ;;  %s623_s23 = sadd.s32 4294967295, %s858_s22   ;;  %s858_s22 = sphi %s905_s22, %s18_s22   ;;  %s854_s21 = sphi %s903_s21, %s1164_s21   ;;  %s850_s20 = sphi %s901_s20, %s1169_s20   ;;  %s846_s19 = sphi %s899_s19, %s1163_s19   ;;  %s842_s18 = sphi %s897_s18, %s1168_s18   ;;  %s838_s17 = sphi %s895_s17, %s1167_s17   ;;  %s834_s16 = sphi %s893_s16, %s1166_s16   ;;  %s830_s15 = sphi %s891_s15, %s1165_s15  }
   0x9   : > { %p52_p0 = scmp.ne.s32.totalorder %s838_s17, %s834_s16  ;;  %p53_p1 = scmp.eq.s32.totalorder %s858_s22, 0 }
   0xa   : > { %p58_p2 = scmp.ne.s32.totalorder %s834_s16, %s830_s15  ;;  %p934_p3 = scmp.eq.s32.totalorder %s623_s23, 0 }
   0xb   : > { %p625_p4 = scmp.ge.s32.totalorder %s858_s22, 1  ;;  %p54_p5 = por %p53_p1, %p52_p0 }
   0xc   : > { %s1151_s24 = scalar_select %p934_p3, 1, 0 }
   0xd   : > { %p160_p6 = scmp.lt.s32.totalorder %s858_s22, 9  ;;  %p942_p7 = por %p934_p3, %p58_p2 }
   0xe   : > { %s1154_s2 = sld [smem:[#allocation15_spill]]  ;;  %p668_p10 = scmp.lt.s32.totalorder %s858_s22, 8 }
   0xf   : > { %s1152_s25 = scalar_select %p942_p7, 1, 0 }
  0x10   : > { %p946_p8 = pnand %p625_p4, %p160_p6  ;;  %p958_p12 = pnand %p668_p10, %p54_p5 }
  0x12   : > { %s1153_s26 = scalar_select %p946_p8, 1, 0 }
  0x13   : > { %p659_p9 = pneg %p946_p8 }
  0x14   : > { %s176_s29 = sshll.u32 %s1154_s2, 4  ;;  %s177_s29 = int_to_ptr.vmem [resolvable:$true] %s176_s29 }
  0x15   : > { %p660_p11 = pnand %p659_p9, %p934_p3  ;;  %s743_s5 = scalar_lea.vmem %s177_s29, 16 }
  0x16   : > { %p744_p13 = scmp.ne.s32.totalorder %s177_s29, %s743_s5  ;;  %p751_p4 = scmp.lt.s32.totalorder %s177_s29, %s177_s29 }
  0x17   : > { %p745_p0 = pneg %p660_p11  ;;  %p752_p6 = scmp.lt.s32.totalorder %s743_s5, %s743_s5 }
  0x19   : > { %p746_p1 = pnand %p745_p0, %p744_p13  ;;  %p753_p7 = por %p752_p6, %p751_p4 }
  0x1b   : > { %p747_p2 = pneg %p746_p1 }
  0x1d   : > { %p754_p8 = pnand %p753_p7, %p747_p2 }
  0x1f   : > { %757 = shalt.err (!%p754_p8)
}
  0x20   : > { %s860_s6 = smov [#allocation10]   ;;  %s27_s7 = sadd.s32 1, %s850_s20 }
  0x21   : > { %662 = dma.vmem_to_smem (!%p660_p11), %s177_s29, 16, %s860_s6, [#allocation9]  }
  0x22   : > { %p28_p5 = scmp.ge.s32.totalorder %s27_s7, 4  ;;  %s30_s8 = sadd.s32 1, %s854_s21 }
  0x23   : > { %s34_s9 = ssub.s32 1, %s854_s21  ;;  %s36_s10 = smul.u32 3, %s854_s21 }
  0x24   : > { %s1171_s7 = smov (%p28_p5, %s27_s7), 0  ;;  %s1173_s8 = smov (!%p28_p5, %s30_s8), %s854_s21 }
  0x25   : > { %s35_s11 = smul.u32 %s850_s20, %s34_s9  ;;  %p32_p7 = scmp.ge.s32.totalorder %s1173_s8, 2 }
  0x26   : > { %s190_s13 = sand.u32 1, %s838_s17   ;;  %p760_p10 = pneg %p958_p12 }
  0x27   : > { %s37_s14 = sadd.s32 %s36_s10, %s35_s11  ;;  %s1175_s8 = smov (%p32_p7, %s1173_s8), 0 }
  0x28   : > { %1156 = sst [smem:[#allocation14_spill]] %s1175_s8  ;;  %s628_s15 = sshll.u32 %s190_s13, 6 }
  0x29   : > { %s648_s23 = sshll.u32 %s37_s14, 10  ;;  %s38_s27 = ssub.s32 1, %s1175_s8 }
  0x2a   : > { %s40_s28 = smul.u32 3, %s1175_s8  ;;  %s980_s2 = scalar_lea.hbm %s1138_s0, %s648_s23 }
  0x2b   : > { %s39_s29 = smul.u32 %s38_s27, %s1171_s7  ;;  %s194_s9 = scalar_lea.vmem [#allocation7], %s628_s15 }
  0x2c   : > { %s205_s10 = sshll.u32 %s194_s9, 4  ;;  %s988_s27 = scalar_lea.sflag [#allocation8], %s190_s13  ;;  %s982_s10 = int_to_ptr.vmem [resolvable:$true] %s205_s10 }
  0x2d   : > { %s41_s11 = sadd.s32 %s40_s28, %s39_s29  ;;  %s758_s8 = scalar_lea.hbm %s980_s2, 1024 }
  0x2e   : > { %s42_s12 = ssub.s32 %s37_s14, %s41_s11  ;;  %p759_p9 = scmp.ne.s32.totalorder %s980_s2, %s758_s8 }
  0x2f   : > { %p984_p8 = scmp.eq.s32.totalorder %s42_s12, 0  ;;  %s763_s28 = scalar_lea.hbm %s1138_s0, 4096 }
  0x30   : > { %p761_p11 = pnand %p760_p10, %p759_p9  ;;  %p764_p0 = scmp.lt.u32.totalorder %s980_s2, %s1138_s0 }
  0x31   : > { %p765_p1 = scmp.lt.u32.totalorder %s763_s28, %s758_s8  ;;  %p767_p4 = scmp.lt.u32.totalorder %s758_s8, %s980_s2 }
  0x32   : > { %p762_p13 = pneg %p761_p11 }
  0x33   : > { %p766_p2 = por %p765_p1, %p764_p0 }
  0x35   : > { %p768_p6 = por %p767_p4, %p766_p2 }
  0x37   : > { %p769_p5 = pnand %p768_p6, %p762_p13 }
  0x39   : > { %772 = shalt.err (!%p769_p5)
}
  0x3a   : > { %s773_s12 = scalar_lea.vmem %s982_s10, 1024  ;;  %s861_s13 = smov [#allocation7]  }
  0x3b   : > { %p774_p7 = scmp.ne.s32.totalorder %s982_s10, %s773_s12  ;;  %s778_s5 = sshll.u32 %s861_s13, 4  ;;  %s779_s5 = int_to_ptr.vmem [resolvable:$false] %s778_s5 }
  0x3c   : > { %s780_s6 = scalar_lea.vmem %s779_s5, 2048  ;;  %p781_p3 = scmp.lt.s32.totalorder %s982_s10, %s779_s5 }
  0x3d   : > { %p776_p9 = pnand %p774_p7, %p760_p10  ;;  %p782_p0 = scmp.lt.s32.totalorder %s780_s6, %s773_s12 }
  0x3f   : > { %p777_p11 = pneg %p776_p9  ;;  %p783_p1 = por %p782_p0, %p781_p3 }
  0x41   : > { %p784_p2 = pnand %p783_p1, %p777_p11 }
  0x43   : > { %787 = shalt.err (!%p784_p2)
}
  0x44   : > { %s862_s8 = smov 128   ;;  %s863_s9 = smov 8  }
  0x45   : > { %666 = dma.hbm_to_vmem [thread:$0]  (!%p958_p12), %s980_s2, 1024, %s982_s10, %s988_s27, %s862_s8, %s862_s8, %s863_s9  }
  0x46   : > { %s1158_s11 = sadd.s32 1, %s838_s17  ;;  %p1159_p10 = scmp.ne.s32.totalorder %s1153_s26, 0 }
  0x47   : > { %s1021_s15 = scalar_select %p984_p8, %s838_s17, %s1158_s11  }
  0x48   : > { %217 = sbr.rel (%p1159_p10) target bundleno = 660 (0x294), region = 36  ;;  %s219_s23 = sand.u32 (!%p1159_p10), 1, %s834_s16  }
  0x49   : > { %s632_s28 = sshll.u32 (!%p1159_p10), %s219_s23, 6  ;;  %s220_s29 = scalar_lea.sflag (!%p1159_p10), [#allocation8], %s219_s23 }
  0x4a   : > { %s1026_s14 = scalar_lea.vmem (!%p1159_p10), [#allocation7], %s632_s28  ;;  %p1160_p3 = scmp.ne.s32.totalorder (!%p1159_p10), %s1152_s25, 0 }
  0x4f   : > { %821 = dma.done.wait (%p1160_p3), %s220_s29, 1024  }
  0x50   : > { %823 = vsyncadd (%p1160_p3), %s220_s29, 4294966272  ;;  %p1161_p12 = scmp.ne.s32.totalorder %s1151_s24, 0 }
  0x52   : > { %825 = dma.done.wait (%p1161_p12), [#allocation9], 16  }
  0x53   : > { %827 = vsyncadd (%p1161_p12), [#allocation9], 4294967280 }
  0x54   : > { %232 = sfence }
  0x55   : > { %s259_s2 = smul.u32 %s842_s18, %s846_s19  ;;  %p267_p8 = scmp.eq.s32.totalorder %s846_s19, 0 }
  0x56   : > { %p268_p13 = scmp.eq.s32.totalorder %s842_s18, 0 }
  0x57   : > { %s634_s21 = sshll.u32 %s259_s2, 3 }
  0x58   : > { %p261_p4 = scmp.lt.s32.totalorder %s634_s21, 31  ;;  %p269_p6 = pnand %p268_p13, %p267_p8 }
  0x59   : > { %vm273_vm0 = vcmask (!%p269_p6), 0   ;;  %v864_v0 = vmov (!%p269_p6), 0.0  }
  0x5a   : > { %s1177_s21 = smov (!%p261_p4, %s634_s21), 31  ;;  %272 = sbr.rel (%p269_p6) target bundleno = 97 (0x61), region = 48 }
  0x5b   : > { %s635_s25 = sshll.u32 %s1177_s21, 3  ;;  %274 = vst.msk [vmem:[#allocation3] sm:$0x1] (!%p269_p6), %vm273_vm0, %v864_v0  ;;  %275 = vst.msk [vmem:[#allocation4] sm:$0x1] (!%p269_p6), %vm273_vm0, %v864_v0 }
  0x5c   : > { %s1043_s10 = scalar_lea.vmem %s1142_s4, %s635_s25 }
  0x61 PF: > { %p636_p5 = scmp.ne.s32.totalorder %s846_s19, 0 }
  0x62   : > { %v279_v1 = vld [vmem:[%s1026_s14] sm:$0xff] (!%p636_p5)  ;;  %v637_v2 = vld [vmem:[%s1139_s1] ss:$0 sm:$0xff] (!%p636_p5)  ;;  %v281_v3 = vld [vmem:[%s1026_s14 + $0x10] sm:$0xff] (!%p636_p5)  ;;  %s638_s12 = sshll.u32 (!%p636_p5), %s842_s18, 6  ;;  %vm320_vm1 = vcmask (!%p636_p5), 7168  }
  0x63   : > { %278 = sbr.rel (%p636_p5) target bundleno = 472 (0x1d8), region = 52  ;;  %v294_v4 = vmul.f32 (!%p636_p5), %v637_v2, %v279_v1  ;;  %v296_v5 = vmul.f32 (!%p636_p5), %v637_v2, %v281_v3  ;;  %v280_v6 = vld [vmem:[%s1026_s14 + $0x8] sm:$0xff] (!%p636_p5)  ;;  %v282_v7 = vld [vmem:[%s1026_s14 + $0x18] sm:$0xff] (!%p636_p5)  ;;  %v283_v10 = vld [vmem:[%s1026_s14 + $0x20] sm:$0xff] (!%p636_p5)  ;;  %s1058_s13 = scalar_lea.vmem (!%p636_p5), [#allocation2], %s638_s12  ;;  %vm356_vm2 = vcmask (!%p636_p5), 0  }
  0x64   : > { %v295_v8 = vmul.f32 (!%p636_p5), %v637_v2, %v280_v6  ;;  %v297_v9 = vmul.f32 (!%p636_p5), %v637_v2, %v282_v7  ;;  %v284_v11 = vld [vmem:[%s1026_s14 + $0x28] sm:$0xff] (!%p636_p5)  ;;  %v298_v12 = vmul.f32 (!%p636_p5), %v637_v2, %v283_v10  ;;  %v285_v14 = vld [vmem:[%s1026_s14 + $0x30] sm:$0xff] (!%p636_p5)  ;;  %v286_v15 = vld [vmem:[%s1026_s14 + $0x38] sm:$0xff] (!%p636_p5) }
  0x65   : > { %302 = vadd.xlane.f32.xlu0 (!%p636_p5), %v294_v4  ;;  %306 = vadd.xlane.f32.xlu1 (!%p636_p5), %v296_v5  ;;  %v299_v13 = vmul.f32 (!%p636_p5), %v637_v2, %v284_v11  ;;  %v300_v16 = vmul.f32 (!%p636_p5), %v637_v2, %v285_v14  ;;  %v301_v17 = vmul.f32 (!%p636_p5), %v637_v2, %v286_v15  ;;  %v329_v14 = vld [vmem:[#allocation3] sm:$0x1] (!%p636_p5) }
  0x69   : > { %304 = vadd.xlane.f32.xlu0 (!%p636_p5), %v295_v8  ;;  %308 = vadd.xlane.f32.xlu1 (!%p636_p5), %v297_v9 }
  0x6d   : > { %310 = vadd.xlane.f32.xlu0 %v298_v12  ;;  %312 = vadd.xlane.f32.xlu1 %v299_v13 }
  0x71   : > { %314 = vadd.xlane.f32.xlu0 %v300_v16  ;;  %316 = vadd.xlane.f32.xlu1 %v301_v17  ;;  %v358_v16 = vld [vmem:[#allocation4] sm:$0x1] }
  0xf2   : > { %v303_v18 = vpop.xlane.xlu0 %302  ;;  %v307_v19 = vpop.xlane.xlu1 %306 }
  0xf3   : > { %321 = vst.msk [vmem:[%s1058_s13] sm:$0xff] %vm320_vm1, %v303_v18  ;;  %323 = vst.msk [vmem:[%s1058_s13 + $0x10] sm:$0xff] %vm320_vm1, %v307_v19  ;;  %v359_v20 = vmul.f32 %v303_v18, %v303_v18  ;;  %v361_v21 = vmul.f32 %v307_v19, %v307_v19  ;;  %v330_v24 = vsel %vm320_vm1, %v303_v18, 0.0  ;;  %v333_v30 = vsel %vm320_vm1, %v307_v19, 0.0 }
  0xf5   : > { %v367_v29 = vsel %vm320_vm1, %v359_v20, 0.0  ;;  %v370_v33 = vsel %vm320_vm1, %v361_v21, 0.0 }
  0xf6   : > { %v305_v22 = vpop.xlane.xlu0 %304  ;;  %v309_v23 = vpop.xlane.xlu1 %308 }
  0xf7   : > { %322 = vst.msk [vmem:[%s1058_s13 + $0x8] sm:$0xff] %vm320_vm1, %v305_v22  ;;  %v331_v25 = vsel %vm320_vm1, %v305_v22, 0.0  ;;  %v360_v26 = vmul.f32 %v305_v22, %v305_v22  ;;  %324 = vst.msk [vmem:[%s1058_s13 + $0x18] sm:$0xff] %vm320_vm1, %v309_v23  ;;  %v362_v27 = vmul.f32 %v309_v23, %v309_v23  ;;  %v335_v32 = vsel %vm320_vm1, %v309_v23, 0.0 }
  0xf8   : > { %v332_v28 = vadd.f32 %v331_v25, %v330_v24 }
  0xf9   : > { %v368_v31 = vsel %vm320_vm1, %v360_v26, 0.0  ;;  %v372_v38 = vsel %vm320_vm1, %v362_v27, 0.0 }
  0xfa   : > { %v369_v34 = vadd.f32 %v368_v31, %v367_v29  ;;  %v334_v35 = vadd.f32 %v333_v30, %v332_v28  ;;  %v311_v36 = vpop.xlane.xlu0 %310  ;;  %v313_v37 = vpop.xlane.xlu1 %312 }
  0xfb   : > { %325 = vst.msk [vmem:[%s1058_s13 + $0x20] sm:$0xff] %vm320_vm1, %v311_v36  ;;  %v337_v39 = vsel %vm320_vm1, %v311_v36, 0.0  ;;  %v363_v40 = vmul.f32 %v311_v36, %v311_v36  ;;  %326 = vst.msk [vmem:[%s1058_s13 + $0x28] sm:$0xff] %vm320_vm1, %v313_v37  ;;  %v364_v41 = vmul.f32 %v313_v37, %v313_v37  ;;  %v339_v45 = vsel %vm320_vm1, %v313_v37, 0.0 }
  0xfc   : > { %v336_v42 = vadd.f32 %v335_v32, %v334_v35  ;;  %v371_v43 = vadd.f32 %v370_v33, %v369_v34 }
  0xfd   : > { %v374_v44 = vsel %vm320_vm1, %v363_v40, 0.0  ;;  %v376_v50 = vsel %vm320_vm1, %v364_v41, 0.0 }
  0xfe   : > { %v373_v46 = vadd.f32 %v372_v38, %v371_v43  ;;  %v338_v47 = vadd.f32 %v337_v39, %v336_v42  ;;  %v315_v48 = vpop.xlane.xlu0 %314  ;;  %v317_v49 = vpop.xlane.xlu1 %316 }
  0xff   : > { %327 = vst.msk [vmem:[%s1058_s13 + $0x30] sm:$0xff] %vm320_vm1, %v315_v48  ;;  %v341_v51 = vsel %vm320_vm1, %v315_v48, 0.0  ;;  %v365_v52 = vmul.f32 %v315_v48, %v315_v48  ;;  %328 = vst.msk [vmem:[%s1058_s13 + $0x38] sm:$0xff] %vm320_vm1, %v317_v49  ;;  %v366_v53 = vmul.f32 %v317_v49, %v317_v49  ;;  %v343_v56 = vsel %vm320_vm1, %v317_v49, 0.0 }
 0x100   : > { %v375_v54 = vadd.f32 %v374_v44, %v373_v46  ;;  %v340_v55 = vadd.f32 %v339_v45, %v338_v47 }
 0x101   : > { %v378_v57 = vsel %vm320_vm1, %v365_v52, 0.0  ;;  %v380_v60 = vsel %vm320_vm1, %v366_v53, 0.0 }
 0x102   : > { %v342_v58 = vadd.f32 %v341_v51, %v340_v55  ;;  %v377_v59 = vadd.f32 %v376_v50, %v375_v54 }
 0x104   : > { %v344_v61 = vadd.f32 %v343_v56, %v342_v58  ;;  %v379_v62 = vadd.f32 %v378_v57, %v377_v59 }
 0x106   : > { %345 = vadd.xlane.f32.xlu0 %v344_v61  ;;  %v381_v63 = vadd.f32 %v380_v60, %v379_v62 }
 0x108   : > { %382 = vadd.xlane.f32.xlu1 %v381_v63 }
 0x193   : > { %v346_v0 = vpop.xlane.xlu0 %345 }
 0x194   : > { %v347_v1 = vrot.slane %v346_v0, 4 }
 0x195   : > { %v383_v2 = vpop.xlane.xlu1 %382 }
 0x196   : > { %v348_v3 = vadd.f32 %v347_v1, %v346_v0  ;;  %v384_v4 = vrot.slane %v383_v2, 4 }
 0x198   : > { %v349_v5 = vrot.slane %v348_v3, 2  ;;  %v385_v6 = vadd.f32 %v384_v4, %v383_v2 }
 0x19a   : > { %v386_v7 = vrot.slane %v385_v6, 2  ;;  %v350_v8 = vadd.f32 %v349_v5, %v348_v3 }
 0x19c   : > { %v387_v9 = vadd.f32 %v386_v7, %v385_v6  ;;  %v351_v10 = vrot.slane %v350_v8, 1 }
 0x19e   : > { %v352_v11 = vadd.f32 %v351_v10, %v350_v8  ;;  %v388_v12 = vrot.slane %v387_v9, 1 }
 0x1a0   : > { %649 = vpush %v352_v11  ;;  %v389_v13 = vadd.f32 %v388_v12, %v387_v9 }
 0x1a2   : > { %651 = vpush %v389_v13 }
 0x1d1   : > { %s650_s5 = spop %649 }
 0x1d2   : > { %v354_v15 = vstv %s650_s5 }
 0x1d3   : > { %v355_v17 = vadd.f32 %v354_v15, %v329_v14  ;;  %s652_s6 = spop %651 }
 0x1d4   : > { %v391_v18 = vstv %s652_s6 }
 0x1d5   : > { %357 = vst.msk [vmem:[#allocation3] sm:$0x1] %vm356_vm2, %v355_v17  ;;  %v392_v19 = vadd.f32 %v391_v18, %v358_v16 }
 0x1d7   : > { %393 = vst.msk [vmem:[#allocation4] sm:$0x1] %vm356_vm2, %v392_v19 }
 0x1d8 PF: > { %p639_p7 = scmp.ne.s32.totalorder %s846_s19, 1 }
 0x1d9   : > { %p640_p9 = scmp.ne.s32.totalorder (!%p639_p7), %s842_s18, 0 }
 0x1da   : > { %397 = sbr.rel (%p639_p7) target bundleno = 660 (0x294), region = 56 }
 0x1e1   : > { %400 = sbr.rel (%p640_p9) target bundleno = 508 (0x1fc), region = 60  ;;  %v401_v20 = vld [vmem:[#allocation3] sm:$0x1] (!%p640_p9)  ;;  %v403_v21 = vld [vmem:[#allocation4] sm:$0x1] (!%p640_p9)  ;;  %s409_s8 = sld [smem:[#allocation10]] (!%p640_p9) }
 0x1e2   : > { %v402_v22 = vmul.f32 (!%p640_p9), 0.00390625, %v401_v20  ;;  %v404_v23 = vmul.f32 (!%p640_p9), 0.00390625, %v403_v21  ;;  %s641_s9 = sld [smem:[#allocation10 + $0x1]] (!%p640_p9)  ;;  %vm412_vm3 = vcmask (!%p640_p9), 0  }
 0x1e4   : > { %v405_v24 = vmul.f32 (!%p640_p9), %v402_v22, %v402_v22 }
 0x1e6   : > { %v406_v25 = vsub.f32 (!%p640_p9), %v404_v23, %v405_v24 }
 0x1e7   : > { %v410_v27 = vstv (!%p640_p9), %s409_s8 }
 0x1e8   : > { %v407_v26 = vadd.f32 1e-05, %v406_v25  ;;  %v416_v30 = vstv %s641_s9 }
 0x1ea   : > { %739 = vrsqrt.f32 %v407_v26 }
 0x1f4   : > { %v740_v28 = vpop.eup %739 }
 0x1f5   : > { %v411_v29 = vmul.f32 %v740_v28, %v410_v27 }
 0x1f7   : > { %413 = vst.msk [vmem:[#allocation5] sm:$0x1] %vm412_vm3, %v411_v29  ;;  %v415_v31 = vmul.f32 %v411_v29, %v402_v22 }
 0x1f9   : > { %v417_v32 = vsub.f32 %v416_v30, %v415_v31 }
 0x1fb   : > { %418 = vst.msk [vmem:[#allocation6] sm:$0x1] %vm412_vm3, %v417_v32 }
 0x1fc PF: > { %s642_s19 = sshll.u32 %s842_s18, 6  ;;  %v865_v34 = vmov 0   ;;  %v645_v60 = vld [vmem:[%s1141_s3] ss:$0 sm:$0xff]  ;;  %vm514_vm4 = vcmask 64512  }
 0x1fd   : > { %742 = vset.pattern.permute.xlu1 %v865_v34  ;;  %741 = vset.pattern.permute.xlu0 %v865_v34  ;;  %s420_s11 = scalar_lea.vmem [#allocation2], %s642_s19 }
 0x1fe   : > { %v643_v33 = vld [vmem:[#allocation5] ss:$0 sm:$0xff]  ;;  %v423_v36 = vld [vmem:[%s420_s11 + $0x10] sm:$0xff]  ;;  %v424_v38 = vld [vmem:[%s420_s11 + $0x18] sm:$0xff] }
 0x1ff   : > { %v421_v37 = vld [vmem:[%s420_s11] sm:$0xff]  ;;  %v438_v39 = vmul.f32 %v643_v33, %v423_v36  ;;  %v439_v41 = vmul.f32 %v643_v33, %v424_v38  ;;  %v422_v42 = vld [vmem:[%s420_s11 + $0x8] sm:$0xff]  ;;  %v428_v52 = vld [vmem:[%s420_s11 + $0x38] sm:$0xff] }
 0x200   : > { %v436_v40 = vmul.f32 %v643_v33, %v421_v37  ;;  %v426_v43 = vld [vmem:[%s420_s11 + $0x28] sm:$0xff]  ;;  %v437_v44 = vmul.f32 %v643_v33, %v422_v42  ;;  %v425_v45 = vld [vmem:[%s420_s11 + $0x20] sm:$0xff]  ;;  %v427_v53 = vld [vmem:[%s420_s11 + $0x30] sm:$0xff]  ;;  %v443_v54 = vmul.f32 %v643_v33, %v428_v52 }
 0x201   : > { %v441_v48 = vmul.f32 %v643_v33, %v426_v43  ;;  %v440_v51 = vmul.f32 %v643_v33, %v425_v45  ;;  %v442_v57 = vmul.f32 %v643_v33, %v427_v53 }
 0x202   : > { %v644_v35 = vld [vmem:[#allocation6] ss:$0 sm:$0xff] }
 0x203   : > { %v453_v46 = vadd.f32 %v644_v35, %v438_v39  ;;  %v451_v47 = vadd.f32 %v644_v35, %v436_v40  ;;  %v454_v49 = vadd.f32 %v644_v35, %v439_v41  ;;  %v452_v50 = vadd.f32 %v644_v35, %v437_v44 }
 0x204   : > { %v456_v55 = vadd.f32 %v644_v35, %v441_v48  ;;  %v455_v56 = vadd.f32 %v644_v35, %v440_v51  ;;  %v458_v58 = vadd.f32 %v644_v35, %v443_v54  ;;  %v457_v59 = vadd.f32 %v644_v35, %v442_v57 }
 0x205   : > { %472 = vperm.xlu1 %742, %v453_v46   ;;  %462 = vperm.xlu0 %741, %v451_v47  }
 0x209   : > { %477 = vperm.xlu1 %742, %v454_v49   ;;  %467 = vperm.xlu0 %741, %v452_v50  }
 0x20d   : > { %487 = vperm.xlu1 %742, %v456_v55   ;;  %482 = vperm.xlu0 %741, %v455_v56  }
 0x211   : > { %497 = vperm.xlu1 %742, %v458_v58   ;;  %492 = vperm.xlu0 %741, %v457_v59  }
 0x284   : > { %v473_v61 = vpop.permute.xlu1 %472  ;;  %v463_v62 = vpop.permute.xlu0 %462 }
 0x285   : > { %v508_v63 = vadd.f32 %v645_v60, %v473_v61  ;;  %v506_v0 = vadd.f32 %v645_v60, %v463_v62 }
 0x287   : > { %517 = vst.msk [vmem:[%s1043_s10 + $0x10] sm:$0xff] %vm514_vm4, %v508_v63  ;;  %515 = vst.msk [vmem:[%s1043_s10] sm:$0xff] %vm514_vm4, %v506_v0 }
 0x288   : > { %v478_v1 = vpop.permute.xlu1 %477  ;;  %v468_v2 = vpop.permute.xlu0 %467 }
 0x289   : > { %v509_v3 = vadd.f32 %v645_v60, %v478_v1  ;;  %v507_v4 = vadd.f32 %v645_v60, %v468_v2 }
 0x28b   : > { %518 = vst.msk [vmem:[%s1043_s10 + $0x18] sm:$0xff] %vm514_vm4, %v509_v3  ;;  %516 = vst.msk [vmem:[%s1043_s10 + $0x8] sm:$0xff] %vm514_vm4, %v507_v4 }
 0x28c   : > { %v488_v5 = vpop.permute.xlu1 %487  ;;  %v483_v6 = vpop.permute.xlu0 %482 }
 0x28d   : > { %v511_v7 = vadd.f32 %v645_v60, %v488_v5  ;;  %v510_v8 = vadd.f32 %v645_v60, %v483_v6 }
 0x28f   : > { %520 = vst.msk [vmem:[%s1043_s10 + $0x28] sm:$0xff] %vm514_vm4, %v511_v7  ;;  %519 = vst.msk [vmem:[%s1043_s10 + $0x20] sm:$0xff] %vm514_vm4, %v510_v8 }
 0x290   : > { %v498_v9 = vpop.permute.xlu1 %497  ;;  %v493_v10 = vpop.permute.xlu0 %492 }
 0x291   : > { %v513_v11 = vadd.f32 %v645_v60, %v498_v9  ;;  %v512_v12 = vadd.f32 %v645_v60, %v493_v10 }
 0x293   : > { %522 = vst.msk [vmem:[%s1043_s10 + $0x38] sm:$0xff] %vm514_vm4, %v513_v11  ;;  %521 = vst.msk [vmem:[%s1043_s10 + $0x30] sm:$0xff] %vm514_vm4, %v512_v12 }
 0x294 PF: > { %s18_s22 = sadd.s32 1, %s858_s22   ;;  %s1162_s28 = smov %s1021_s15 }
 0x295   : > { %p15_p11 = scmp.ge.s32.totalorder %s18_s22, 10   ;;  %s1163_s19 = sld [smem:[#allocation13_spill]] }
 0x296   : > { %s1164_s21 = sld [smem:[#allocation14_spill]]  ;;  %s1165_s15 = smov %s834_s16 }
 0x297   : > { %s1166_s16 = smov %s838_s17  ;;  %s1167_s17 = smov %s1162_s28 }
 0x298   : > { %s1168_s18 = smov %s850_s20  ;;  %s1169_s20 = smov %s1171_s7 }
 0x299   :  { %17 = sbr.rel (!%p15_p11) target bundleno = 8 (0x8), region = 99 }
 0x2a0   :  { %548 = vsyncpa [#allocation8], 1 }
 0x2a1   :  { %550 = vsyncpa [#allocation8 + $0x1], 1 }
 0x2a2   :  { %551 = vsyncpa [#allocation9], 1 }
 0x2a3   :  { %553 = vsyncpa [#allocation9 + $0x1], 1 }

</bundles_post_ra>
